<compile_context>
chip_gen: v5e
topology: v5e:2x2
jax: 0.10.0
libtpu: 0.0.40
codegen_flags: <defaults>
</compile_context>

<pallas_src>
import functools

import jax
import jax.numpy as jnp
from jax import lax
from jax.experimental import pallas as pl
from jax.experimental.pallas import tpu as pltpu


# ---------------------------------------------------------------------------
# Kernel 1: streaming pooling over the [B, S, H] encoder output.
# ---------------------------------------------------------------------------
def _pool_kernel(e_sm, seq_ref, pooled_ref, acc_ref, *, s_total):
    b_idx = pl.program_id(0)
    s_idx = pl.program_id(1)
    n_s = pl.num_programs(1)

    bt, st, hidden = seq_ref.shape
    ps = acc_ref.shape[2]          # partial-sum sublane factor (8, or 1 if st < 8)

    lo = s_idx * st                # first global position covered by this tile
    hi = lo + st - 1               # last (may exceed S-1 on the padded tail)
    row0 = b_idx * bt              # first global batch row of this tile

    # ---- init accumulators / capture CLS on the first seq tile ----
    @pl.when(s_idx == 0)
    def _init():
        acc_ref[...] = jnp.zeros_like(acc_ref)
        pooled_ref[:, 0, :] = seq_ref[:, 0, :].astype(jnp.float32)   # global row 0

    # Global positions for this tile (sublane iota, broadcast over lanes).
    pos = lax.broadcasted_iota(jnp.int32, (st, 1), 0) + lo

    # ---- per-row masked partial sums (VPU only), gated on span overlap ----
    for i in range(bt):
        base = (row0 + i) * 4
        s1 = e_sm[base + 0]
        t1 = e_sm[base + 1]
        s2 = e_sm[base + 2]
        t2 = e_sm[base + 3]
        hit = jnp.logical_or(jnp.logical_and(s1 <= hi, t1 >= lo),
                             jnp.logical_and(s2 <= hi, t2 >= lo))

        @pl.when(hit)
        def _accumulate_row(i=i, s1=s1, t1=t1, s2=s2, t2=t2):
            row = seq_ref[i].astype(jnp.float32)                 # (st, H), one upcast
            m1 = jnp.logical_and(pos >= s1, pos <= t1)           # (st, 1)
            m2 = jnp.logical_and(pos >= s2, pos <= t2)
            # where-select (not multiply) so padded-tail garbage never NaNs the sum;
            # reduce st -> ps with pure vreg adds, keep the ps-sublane partials.
            p1 = jnp.where(m1, row, 0.0).reshape(st // ps, ps, hidden).sum(axis=0)
            p2 = jnp.where(m2, row, 0.0).reshape(st // ps, ps, hidden).sum(axis=0)
            acc_ref[i, 0] = acc_ref[i, 0] + p1
            acc_ref[i, 1] = acc_ref[i, 1] + p2

    # ---- finalize on the last seq tile: ps->1 reduce + mean over full S ----
    @pl.when(s_idx == n_s - 1)
    def _finalize():
        inv_s = 1.0 / float(s_total)          # torch.mean(dim=1) divides by full S
        sums = jnp.sum(acc_ref[...], axis=2)  # (bt, 2, H)
        pooled_ref[:, 1, :] = sums[:, 0, :] * inv_s
        pooled_ref[:, 2, :] = sums[:, 1, :] * inv_s


# ---------------------------------------------------------------------------
# Kernel 2: tanh + Linear heads + label projection over all B rows at once.
# ---------------------------------------------------------------------------
def _head_kernel(pooled_ref, wc_ref, bc_ref, we_ref, be_ref, wo_ref, bo_ref, out_ref):
    hidden = wc_ref.shape[0]
    bm = pooled_ref.shape[0]

    # Dropout is identity in eval mode -> Tanh -> Linear.
    cls_h = jnp.tanh(pooled_ref[:, 0, :])
    ent = jnp.tanh(jnp.concatenate([pooled_ref[:, 1, :], pooled_ref[:, 2, :]], axis=0))

    h_c = jnp.dot(cls_h, wc_ref[...], preferred_element_type=jnp.float32) + bc_ref[...]
    h_e = jnp.dot(ent, we_ref[...], preferred_element_type=jnp.float32) + be_ref[...]
    h_e1 = h_e[:bm]
    h_e2 = h_e[bm:]

    # Label projection without a lane-axis concat: three partial matmuls
    # against static slices of the lane-padded wo, summed in f32.
    logits = (jnp.dot(h_c, wo_ref[0:hidden, :], preferred_element_type=jnp.float32)
              + jnp.dot(h_e1, wo_ref[hidden:2 * hidden, :], preferred_element_type=jnp.float32)
              + jnp.dot(h_e2, wo_ref[2 * hidden:3 * hidden, :], preferred_element_type=jnp.float32)
              + bo_ref[...])
    out_ref[...] = logits.astype(out_ref.dtype)


# ---------------------------------------------------------------------------
# Wrappers.
# ---------------------------------------------------------------------------
def _pick_batch_tile(batch):
    """Largest divisor of B (<=8) that still leaves >=2 batch grid steps (megacore)."""
    for cand in (8, 4, 2, 1):
        if batch % cand == 0 and batch // cand >= 2:
            return cand
    return batch


def _pick_seq_tile(seq_len, bt, hidden, itemsize, budget_bytes):
    """Largest multiple-of-8 seq tile whose double-buffered footprint fits the budget."""
    if seq_len < 8:
        return seq_len
    st = min((budget_bytes // (2 * bt * hidden * itemsize)) // 8 * 8,
             (seq_len // 8) * 8)
    return max(int(st), 8)


def prepare_head_params(params):
    """Hoisted (call once): lane-pad the label projection, reshape biases."""
    hidden = params["wc"].shape[0]
    num_labels = params["wo"].shape[1]
    l_pad = ((num_labels + 127) // 128) * 128
    wo_pad = jnp.zeros((3 * hidden, l_pad), params["wo"].dtype).at[:, :num_labels].set(params["wo"])
    bo_pad = jnp.zeros((1, l_pad), params["bo"].dtype).at[:, :num_labels].set(params["bo"])
    return dict(
        wc=params["wc"], bc=params["bc"].reshape(1, hidden),
        we=params["we"], be=params["be"].reshape(1, hidden),
        wo_pad=wo_pad, bo_pad=bo_pad,
        hidden=hidden, num_labels=num_labels, l_pad=l_pad)


def rbert_pool(seq_output, e, *, bt=None, st=None, seq_tile_budget_bytes=16 << 20):
    """Streaming pooling kernel: returns pooled (B, 3, H) f32 = (cls, e1_mean, e2_mean)."""
    B, S, H = seq_output.shape
    itemsize = jnp.dtype(seq_output.dtype).itemsize

    if bt is None:
        bt = _pick_batch_tile(B)
    assert B % bt == 0, "batch must be divisible by the batch tile"
    if st is None:
        st = _pick_seq_tile(S, bt, H, itemsize, seq_tile_budget_bytes)
    st = int(min(st, S))
    ps = 8 if st % 8 == 0 else 1

    grid = (B // bt, pl.cdiv(S, st))

    # Explicit VMEM budget (review #5): seq tile double-buffered + out block + scratch.
    footprint = (2 * bt * st * H * itemsize          # seq tile, 2-deep
                 + 2 * bt * 3 * H * 4                # pooled out block
                 + bt * 2 * ps * H * 4)              # f32 partial-sum scratch
    vmem_limit = int(min(max(2 * footprint, 16 << 20), 48 << 20))

    cost = pl.CostEstimate(
        flops=int(4 * B * S * H),
        transcendentals=0,
        bytes_accessed=int(B * S * H * itemsize + B * 3 * H * 4 + B * 4 * 4),
    )

    kernel = functools.partial(_pool_kernel, s_total=S)
    return pl.pallas_call(
        kernel,
        out_shape=jax.ShapeDtypeStruct((B, 3, H), jnp.float32),
        grid_spec=pltpu.PrefetchScalarGridSpec(
            num_scalar_prefetch=1,                                # spans -> SMEM
            grid=grid,
            in_specs=[pl.BlockSpec((bt, st, H), lambda b, s, e_sm: (b, s, 0))],
            out_specs=pl.BlockSpec((bt, 3, H), lambda b, s, e_sm: (b, 0, 0)),
            scratch_shapes=[pltpu.VMEM((bt, 2, ps, H), jnp.float32)],
        ),
        compiler_params=pltpu.CompilerParams(
            dimension_semantics=("parallel", "arbitrary"),
            vmem_limit_bytes=vmem_limit,
        ),
        cost_estimate=cost,
    )(e.reshape(-1).astype(jnp.int32), seq_output)


def rbert_head(pooled, head_params):
    """Head kernel: tanh + Linear heads + label projection, all B rows per step."""
    B, _, H = pooled.shape
    l_pad = head_params["l_pad"]
    num_labels = head_params["num_labels"]
    bm = B if B <= 256 else 256          # usually a single grid step (full-M GEMM)
    grid = (pl.cdiv(B, bm),)

    w_bytes = 2 * H * H * 4 + 2 * H * 4 + 3 * H * l_pad * 4 + l_pad * 4
    footprint = 2 * (w_bytes + bm * 3 * H * 4 + bm * l_pad * 4)
    vmem_limit = int(min(max(2 * footprint, 16 << 20), 48 << 20))

    cost = pl.CostEstimate(
        flops=int(2 * B * H * (3 * H + 3 * l_pad)),
        transcendentals=int(3 * B * H),
        bytes_accessed=int(B * 3 * H * 4 + w_bytes + B * l_pad * 4),
    )

    out = pl.pallas_call(
        _head_kernel,
        out_shape=jax.ShapeDtypeStruct((B, l_pad), jnp.float32),
        grid_spec=pltpu.PrefetchScalarGridSpec(
            num_scalar_prefetch=0,
            grid=grid,
            in_specs=[
                pl.BlockSpec((bm, 3, H), lambda i: (i, 0, 0)),
                pl.BlockSpec((H, H), lambda i: (0, 0)),          # wc
                pl.BlockSpec((1, H), lambda i: (0, 0)),          # bc
                pl.BlockSpec((H, H), lambda i: (0, 0)),          # we
                pl.BlockSpec((1, H), lambda i: (0, 0)),          # be
                pl.BlockSpec((3 * H, l_pad), lambda i: (0, 0)),  # wo (lane-padded)
                pl.BlockSpec((1, l_pad), lambda i: (0, 0)),      # bo (lane-padded)
            ],
            out_specs=pl.BlockSpec((bm, l_pad), lambda i: (i, 0)),
        ),
        compiler_params=pltpu.CompilerParams(
            dimension_semantics=("parallel",),
            vmem_limit_bytes=vmem_limit,
        ),
        cost_estimate=cost,
    )(pooled, head_params["wc"], head_params["bc"],
      head_params["we"], head_params["be"],
      head_params["wo_pad"], head_params["bo_pad"])
    return out[:, :num_labels]


def rbert_forward(seq_output, e, head_params, *, bt=None, st=None):
    """seq_output: [B, S, H] (f32 or bf16) from the BERT encoder; e: [B, 4] int32 spans."""
    pooled = rbert_pool(seq_output, e, bt=bt, st=st)
    return rbert_head(pooled, head_params)


# ---------------------------------------------------------------------------
# Pure-JAX reference (mirrors the PyTorch module in eval mode).
# ---------------------------------------------------------------------------
def rbert_reference(seq_output, e, params):
    seq = seq_output.astype(jnp.float32)
    B, S, H = seq.shape
    idx = jnp.arange(S)[None, :]

    def entity_avg(start, end):
        mask = ((idx >= start[:, None]) & (idx <= end[:, None])).astype(jnp.float32)
        return jnp.mean(seq * mask[:, :, None], axis=1)   # divides by full S, like torch.mean

    cls_h = jnp.tanh(seq[:, 0, :]) @ params["wc"] + params["bc"]
    e1_h = jnp.tanh(entity_avg(e[:, 0], e[:, 1])) @ params["we"] + params["be"]
    e2_h = jnp.tanh(entity_avg(e[:, 2], e[:, 3])) @ params["we"] + params["be"]
    concat_h = jnp.concatenate([cls_h, e1_h, e2_h], axis=-1)
    return concat_h @ params["wo"] + params["bo"]


if __name__ == "__main__":
    B, S, H, NUM_LABELS = 2, 16, 32, 8

    key = jax.random.PRNGKey(0)
    k_seq, k_wc, k_we, k_wo, k_bc, k_be, k_bo = jax.random.split(key, 7)

    seq_f32 = jax.random.normal(k_seq, (B, S, H), dtype=jnp.float32)
    seq_bf16 = seq_f32.astype(jnp.bfloat16)   # encoder output kept in bf16 (half HBM traffic)
    # entity spans: (e1_start, e1_end, e2_start, e2_end), valid within [0, S)
    e = jnp.array([[1, 3, 9, 12],
                   [0, 2, 10, 15]], dtype=jnp.int32)

    scale = 0.02
    params = {
        "wc": scale * jax.random.normal(k_wc, (H, H), dtype=jnp.float32),
        "bc": scale * jax.random.normal(k_bc, (H,), dtype=jnp.float32),
        "we": scale * jax.random.normal(k_we, (H, H), dtype=jnp.float32),
        "be": scale * jax.random.normal(k_be, (H,), dtype=jnp.float32),
        "wo": scale * jax.random.normal(k_wo, (3 * H, NUM_LABELS), dtype=jnp.float32),
        "bo": scale * jax.random.normal(k_bo, (NUM_LABELS,), dtype=jnp.float32),
    }

    head_params = prepare_head_params(params)   # padding hoisted out of the forward

    # st=8 -> seq grid of 2: exercises init / span-gated accumulate / finalize,
    # and bt defaults to 1 so the batch grid axis (parallel) has 2 steps.
    out = rbert_forward(seq_bf16, e, head_params, st=8)
    out = jax.block_until_ready(out)

    ref = rbert_reference(seq_bf16, e, params)   # reference on the same bf16-rounded input
    assert out.shape == (B, NUM_LABELS)
    max_diff = jnp.max(jnp.abs(out - ref))
    assert jnp.allclose(out, ref, atol=5e-5, rtol=5e-5), (
        f"mismatch vs reference: max abs diff {max_diff}")

    print("KERNEL_OK")
</pallas_src>

<mosaic_0001>
module attributes {stable_mosaic.version = 11 : i64} {
  func.func @_pool_kernel(%arg0: i32, %arg1: i32, %arg2: memref<8xi32, #tpu.memory_space<smem>>, %arg3: memref<1x8x32xbf16, #tpu.memory_space<vmem>>, %arg4: memref<1x3x32xf32, #tpu.memory_space<vmem>>, %arg5: memref<1x2x8x32xf32, #tpu.memory_space<vmem>>) attributes {dimension_semantics = [#tpu.dimension_semantics<parallel>, #tpu.dimension_semantics<arbitrary>], iteration_bounds = array<i64: 2, 2>, scalar_prefetch = 1 : i64, scratch_operands = 1 : i64, tpu.core_type = #tpu.core_type<tc>, window_params = [{transform_indices = @transform_0, window_bounds = array<i64: 1, 8, 32>}, {transform_indices = @transform_1, window_bounds = array<i64: 1, 3, 32>}]} {
    %c8_i32 = arith.constant 8 : i32
    %0 = arith.muli %arg1, %c8_i32 : i32
    %c8_i32_0 = arith.constant 8 : i32
    %1 = arith.addi %0, %c8_i32_0 : i32
    %c1_i32 = arith.constant 1 : i32
    %2 = arith.subi %1, %c1_i32 : i32
    %c1_i32_1 = arith.constant 1 : i32
    %3 = arith.muli %arg0, %c1_i32_1 : i32
    %c0_i32 = arith.constant 0 : i32
    %4 = arith.cmpi eq, %arg1, %c0_i32 : i32
    %5 = arith.extui %4 : i1 to i32
    %c0_i32_2 = arith.constant 0 : i32
    %6 = arith.cmpi ne, %5, %c0_i32_2 : i32
    scf.if %6 {
      %cst = arith.constant 0.000000e+00 : f32
      %36 = vector.broadcast %cst : f32 to vector<1x2x8x32xf32>
      %c0 = arith.constant 0 : index
      %c0_9 = arith.constant 0 : index
      %c0_10 = arith.constant 0 : index
      %c0_11 = arith.constant 0 : index
      %37 = vector.load %arg5[%c0, %c0_9, %c0_10, %c0_11] : memref<1x2x8x32xf32, #tpu.memory_space<vmem>>, vector<1x2x8x32xf32>
      tpu.vector_store %arg5[%c0, %c0_9, %c0_10, %c0_11], %36 {strides = array<i32>} : memref<1x2x8x32xf32, #tpu.memory_space<vmem>>, vector<1x2x8x32xf32>,
      %c0_12 = arith.constant 0 : index
      %c0_13 = arith.constant 0 : index
      %c0_14 = arith.constant 0 : index
      %38 = vector.load %arg3[%c0_12, %c0_13, %c0_14] : memref<1x8x32xbf16, #tpu.memory_space<vmem>>, vector<1x1x32xbf16>
      %39 = vector.shape_cast %38 : vector<1x1x32xbf16> to vector<1x32xbf16>
      %40 = arith.extf %39 : vector<1x32xbf16> to vector<1x32xf32>
      %c0_15 = arith.constant 0 : index
      %c0_16 = arith.constant 0 : index
      %c0_17 = arith.constant 0 : index
      %41 = vector.load %arg4[%c0_15, %c0_16, %c0_17] : memref<1x3x32xf32, #tpu.memory_space<vmem>>, vector<1x1x32xf32>
      %42 = vector.shape_cast %41 : vector<1x1x32xf32> to vector<1x32xf32>
      %43 = vector.shape_cast %40 : vector<1x32xf32> to vector<1x1x32xf32>
      tpu.vector_store %arg4[%c0_15, %c0_16, %c0_17], %43 {strides = array<i32>} : memref<1x3x32xf32, #tpu.memory_space<vmem>>, vector<1x1x32xf32>,
    } else {
    }
    %7 = tpu.iota {dimensions = array<i32: 0>} : vector<8x1xi32>
    %8 = vector.broadcast %0 : i32 to vector<8x1xi32>
    %9 = arith.addi %7, %8 : vector<8x1xi32>
    %c0_i32_3 = arith.constant 0 : i32
    %10 = arith.addi %3, %c0_i32_3 : i32
    %c4_i32 = arith.constant 4 : i32
    %11 = arith.muli %10, %c4_i32 : i32
    %c0_i32_4 = arith.constant 0 : i32
    %12 = arith.addi %11, %c0_i32_4 : i32
    %13 = arith.index_cast %12 : i32 to index
    %14 = memref.load %arg2[%13] : memref<8xi32, #tpu.memory_space<smem>>
    %c1_i32_5 = arith.constant 1 : i32
    %15 = arith.addi %11, %c1_i32_5 : i32
    %16 = arith.index_cast %15 : i32 to index
    %17 = memref.load %arg2[%16] : memref<8xi32, #tpu.memory_space<smem>>
    %c2_i32 = arith.constant 2 : i32
    %18 = arith.addi %11, %c2_i32 : i32
    %19 = arith.index_cast %18 : i32 to index
    %20 = memref.load %arg2[%19] : memref<8xi32, #tpu.memory_space<smem>>
    %c3_i32 = arith.constant 3 : i32
    %21 = arith.addi %11, %c3_i32 : i32
    %22 = arith.index_cast %21 : i32 to index
    %23 = memref.load %arg2[%22] : memref<8xi32, #tpu.memory_space<smem>>
    %24 = arith.cmpi sle, %14, %2 : i32
    %25 = arith.cmpi sge, %17, %0 : i32
    %26 = arith.andi %24, %25 : i1
    %27 = arith.cmpi sle, %20, %2 : i32
    %28 = arith.cmpi sge, %23, %0 : i32
    %29 = arith.andi %27, %28 : i1
    %30 = arith.ori %26, %29 : i1
    %31 = arith.extui %30 : i1 to i32
    %c0_i32_6 = arith.constant 0 : i32
    %32 = arith.cmpi ne, %31, %c0_i32_6 : i32
    scf.if %32 {
      %c0 = arith.constant 0 : index
      %c0_9 = arith.constant 0 : index
      %c0_10 = arith.constant 0 : index
      %36 = vector.load %arg3[%c0, %c0_9, %c0_10] : memref<1x8x32xbf16, #tpu.memory_space<vmem>>, vector<1x8x32xbf16>
      %37 = vector.shape_cast %36 : vector<1x8x32xbf16> to vector<8x32xbf16>
      %38 = arith.extf %37 : vector<8x32xbf16> to vector<8x32xf32>
      %39 = vector.broadcast %14 : i32 to vector<8x1xi32>
      %40 = arith.cmpi sge, %9, %39 : vector<8x1xi32>
      %41 = vector.broadcast %17 : i32 to vector<8x1xi32>
      %42 = arith.cmpi sle, %9, %41 : vector<8x1xi32>
      %43 = arith.andi %40, %42 : vector<8x1xi1>
      %44 = vector.broadcast %20 : i32 to vector<8x1xi32>
      %45 = arith.cmpi sge, %9, %44 : vector<8x1xi32>
      %46 = vector.broadcast %23 : i32 to vector<8x1xi32>
      %47 = arith.cmpi sle, %9, %46 : vector<8x1xi32>
      %48 = arith.andi %45, %47 : vector<8x1xi1>
      %cst = arith.constant 0.000000e+00 : f32
      %49 = vector.shape_cast %43 : vector<8x1xi1> to vector<8x1xi1>
      %50 = vector.broadcast %49 : vector<8x1xi1> to vector<8x32xi1>
      %51 = vector.broadcast %cst : f32 to vector<8x32xf32>
      %52 = arith.select %50, %38, %51 : vector<8x32xi1>, vector<8x32xf32>
      %53 = vector.shape_cast %52 : vector<8x32xf32> to vector<1x8x32xf32>
      %cst_11 = arith.constant dense<0.000000e+00> : vector<8x32xf32>
      %54 = vector.multi_reduction <add>, %53, %cst_11 [0] : vector<1x8x32xf32> to vector<8x32xf32>
      %cst_12 = arith.constant 0.000000e+00 : f32
      %55 = vector.shape_cast %48 : vector<8x1xi1> to vector<8x1xi1>
      %56 = vector.broadcast %55 : vector<8x1xi1> to vector<8x32xi1>
      %57 = vector.broadcast %cst_12 : f32 to vector<8x32xf32>
      %58 = arith.select %56, %38, %57 : vector<8x32xi1>, vector<8x32xf32>
      %59 = vector.shape_cast %58 : vector<8x32xf32> to vector<1x8x32xf32>
      %cst_13 = arith.constant dense<0.000000e+00> : vector<8x32xf32>
      %60 = vector.multi_reduction <add>, %59, %cst_13 [0] : vector<1x8x32xf32> to vector<8x32xf32>
      %c0_14 = arith.constant 0 : index
      %c0_15 = arith.constant 0 : index
      %c0_16 = arith.constant 0 : index
      %c0_17 = arith.constant 0 : index
      %61 = vector.load %arg5[%c0_14, %c0_15, %c0_16, %c0_17] : memref<1x2x8x32xf32, #tpu.memory_space<vmem>>, vector<1x1x8x32xf32>
      %62 = vector.shape_cast %61 : vector<1x1x8x32xf32> to vector<8x32xf32>
      %63 = arith.addf %62, %54 : vector<8x32xf32>
      %c0_18 = arith.constant 0 : index
      %c0_19 = arith.constant 0 : index
      %c0_20 = arith.constant 0 : index
      %c0_21 = arith.constant 0 : index
      %64 = vector.load %arg5[%c0_18, %c0_19, %c0_20, %c0_21] : memref<1x2x8x32xf32, #tpu.memory_space<vmem>>, vector<1x1x8x32xf32>
      %65 = vector.shape_cast %64 : vector<1x1x8x32xf32> to vector<8x32xf32>
      %66 = vector.shape_cast %63 : vector<8x32xf32> to vector<1x1x8x32xf32>
      tpu.vector_store %arg5[%c0_18, %c0_19, %c0_20, %c0_21], %66 {strides = array<i32>} : memref<1x2x8x32xf32, #tpu.memory_space<vmem>>, vector<1x1x8x32xf32>,
      %c0_22 = arith.constant 0 : index
      %c1 = arith.constant 1 : index
      %c0_23 = arith.constant 0 : index
      %c0_24 = arith.constant 0 : index
      %67 = vector.load %arg5[%c0_22, %c1, %c0_23, %c0_24] : memref<1x2x8x32xf32, #tpu.memory_space<vmem>>, vector<1x1x8x32xf32>
      %68 = vector.shape_cast %67 : vector<1x1x8x32xf32> to vector<8x32xf32>
      %69 = arith.addf %68, %60 : vector<8x32xf32>
      %c0_25 = arith.constant 0 : index
      %c1_26 = arith.constant 1 : index
      %c0_27 = arith.constant 0 : index
      %c0_28 = arith.constant 0 : index
      %70 = vector.load %arg5[%c0_25, %c1_26, %c0_27, %c0_28] : memref<1x2x8x32xf32, #tpu.memory_space<vmem>>, vector<1x1x8x32xf32>
      %71 = vector.shape_cast %70 : vector<1x1x8x32xf32> to vector<8x32xf32>
      %72 = vector.shape_cast %69 : vector<8x32xf32> to vector<1x1x8x32xf32>
      tpu.vector_store %arg5[%c0_25, %c1_26, %c0_27, %c0_28], %72 {strides = array<i32>} : memref<1x2x8x32xf32, #tpu.memory_space<vmem>>, vector<1x1x8x32xf32>,
    } else {
    }
    %c1_i32_7 = arith.constant 1 : i32
    %33 = arith.cmpi eq, %arg1, %c1_i32_7 : i32
    %34 = arith.extui %33 : i1 to i32
    %c0_i32_8 = arith.constant 0 : i32
    %35 = arith.cmpi ne, %34, %c0_i32_8 : i32
    scf.if %35 {
      %c0 = arith.constant 0 : index
      %c0_9 = arith.constant 0 : index
      %c0_10 = arith.constant 0 : index
      %c0_11 = arith.constant 0 : index
      %36 = vector.load %arg5[%c0, %c0_9, %c0_10, %c0_11] : memref<1x2x8x32xf32, #tpu.memory_space<vmem>>, vector<1x2x8x32xf32>
      %cst = arith.constant dense<0.000000e+00> : vector<1x2x32xf32>
      %37 = vector.multi_reduction <add>, %36, %cst [2] : vector<1x2x8x32xf32> to vector<1x2x32xf32>
      %38 = vector.extract_strided_slice %37 {offsets = [0, 0, 0], sizes = [1, 1, 32], strides = [1, 1, 1]} : vector<1x2x32xf32> to vector<1x1x32xf32>
      %39 = vector.shape_cast %38 : vector<1x1x32xf32> to vector<1x32xf32>
      %cst_12 = arith.constant 6.250000e-02 : f32
      %40 = vector.broadcast %cst_12 : f32 to vector<1x32xf32>
      %41 = arith.mulf %39, %40 : vector<1x32xf32>
      %c0_13 = arith.constant 0 : index
      %c1 = arith.constant 1 : index
      %c0_14 = arith.constant 0 : index
      %42 = vector.load %arg4[%c0_13, %c1, %c0_14] : memref<1x3x32xf32, #tpu.memory_space<vmem>>, vector<1x1x32xf32>
      %43 = vector.shape_cast %42 : vector<1x1x32xf32> to vector<1x32xf32>
      %44 = vector.shape_cast %41 : vector<1x32xf32> to vector<1x1x32xf32>
      tpu.vector_store %arg4[%c0_13, %c1, %c0_14], %44 {strides = array<i32>} : memref<1x3x32xf32, #tpu.memory_space<vmem>>, vector<1x1x32xf32>,
      %45 = vector.extract_strided_slice %37 {offsets = [0, 1, 0], sizes = [1, 1, 32], strides = [1, 1, 1]} : vector<1x2x32xf32> to vector<1x1x32xf32>
      %46 = vector.shape_cast %45 : vector<1x1x32xf32> to vector<1x32xf32>
      %cst_15 = arith.constant 6.250000e-02 : f32
      %47 = vector.broadcast %cst_15 : f32 to vector<1x32xf32>
      %48 = arith.mulf %46, %47 : vector<1x32xf32>
      %c0_16 = arith.constant 0 : index
      %c2 = arith.constant 2 : index
      %c0_17 = arith.constant 0 : index
      %49 = vector.load %arg4[%c0_16, %c2, %c0_17] : memref<1x3x32xf32, #tpu.memory_space<vmem>>, vector<1x1x32xf32>
      %50 = vector.shape_cast %49 : vector<1x1x32xf32> to vector<1x32xf32>
      %51 = vector.shape_cast %48 : vector<1x32xf32> to vector<1x1x32xf32>
      tpu.vector_store %arg4[%c0_16, %c2, %c0_17], %51 {strides = array<i32>} : memref<1x3x32xf32, #tpu.memory_space<vmem>>, vector<1x1x32xf32>,
    } else {
    }
    return
  }
  func.func @transform_0(%arg0: i32, %arg1: i32, %arg2: memref<8xi32, #tpu.memory_space<smem>>) -> (i32, i32, i32) {
    %c0_i32 = arith.constant 0 : i32
    %c0_i32_0 = arith.constant 0 : i32
    return %arg0, %arg1, %c0_i32 : i32, i32, i32
  }
  func.func @transform_1(%arg0: i32, %arg1: i32, %arg2: memref<8xi32, #tpu.memory_space<smem>>) -> (i32, i32, i32) {
    %c0_i32 = arith.constant 0 : i32
    %c0_i32_0 = arith.constant 0 : i32
    %c0_i32_1 = arith.constant 0 : i32
    return %arg0, %c0_i32, %c0_i32_0 : i32, i32, i32
  }
}

</mosaic_0001>

<bundles_post_ra>
// kernel: tpu_custom_call.1
= control target key start
LH: loop header
LB: loop body
LE: loop exit
PB: predicated region body
PF: predicated region fallthrough
CT: control target
= control target key end

     0   :  { %s529_s12 = smov [#allocation4]   ;;  %s688_s0 = inlined_call_operand.hbm [shape: s32[8], index: 0, kind: input, shape index: {}]   ;;  %s689_s1 = inlined_call_operand.hbm [shape: bf16[2,16,32], index: 1, kind: input, shape index: {}]   ;;  %s690_s2 = inlined_call_operand.vmem [shape: f32[2,3,32], index: 2, kind: output, shape index: {}]  }
   0x1   :  { %s8_s11 = sshll.u32 %s688_s0, 4  ;;  %s9_s11 = int_to_ptr.hbm [resolvable:$true] %s8_s11 }
   0x2   :  { %11 = dma.hbm_to_smem %s9_s11, 16, %s529_s12, [#allocation3] }
   0x3   :  { %491 = dma.done.wait [#allocation3], 16 }
   0x4   :  { %492 = vsyncadd [#allocation3], 4294967280 }
   0x5   :  { %14 = sfence }
   0x6   :  { %15 = vsyncpa [#allocation6], 0 }
   0x7   :  { %17 = vsyncpa [#allocation6 + $0x1], 0  ;;  %s549_s13 = smov 0   ;;  %s551_s14 = smov 0  }
   0x8   :  { %s553_s15 = smov 0   ;;  %s555_s16 = smov 0  }
   0x9   :  { %s557_s17 = smov 0   ;;  %s559_s18 = smov 0  }
   0xa   :  { %s561_s0 = smov 0   ;;  %s563_s19 = smov 0  }
   0xb LB: > { %s328_s20 = sadd.s32 4294967295, %s527_s19   ;;  %s32_s21 = sadd.s32 1, %s519_s18  ;;  %s527_s19 = sphi %s563_s19, %s23_s19   ;;  %s523_s0 = sphi %s561_s0, %s699_s0   ;;  %s519_s18 = sphi %s559_s18, %s698_s18   ;;  %s515_s17 = sphi %s557_s17, %s697_s17   ;;  %s511_s16 = sphi %s555_s16, %s696_s16   ;;  %s507_s15 = sphi %s553_s15, %s695_s15   ;;  %s503_s14 = sphi %s551_s14, %s694_s14   ;;  %s499_s13 = sphi %s549_s13, %s693_s13  }
   0xc   : > { %p33_p0 = scmp.ge.s32.totalorder %s32_s21, 2  ;;  %s35_s22 = sadd.s32 1, %s523_s0 }
   0xd   : > { %s44_s23 = sadd.s32 1, %s507_s15  ;;  %p51_p1 = scmp.ne.s32.totalorder %s507_s15, %s503_s14 }
   0xe   : > { %s701_s21 = smov (%p33_p0, %s32_s21), 0  ;;  %s703_s22 = smov (!%p33_p0, %s35_s22), %s523_s0 }
   0xf   : > { %s40_s24 = ssub.s32 %s519_s18, %s701_s21  ;;  %p52_p2 = scmp.eq.s32.totalorder %s527_s19, 0 }
  0x10   : > { %p37_p3 = scmp.ge.s32.totalorder %s703_s22, 2  ;;  %p57_p4 = scmp.ne.s32.totalorder %s503_s14, %s499_s13 }
  0x11   : > { %p600_p5 = por %p52_p2, %p51_p1  ;;  %p58_p6 = scmp.eq.s32.totalorder %s328_s20, 0 }
  0x12   : > { %s705_s22 = smov (%p37_p3, %s703_s22), 0  ;;  %p350_p8 = scmp.lt.s32.totalorder %s527_s19, 4 }
  0x13   : > { %p606_p7 = por %p58_p6, %p57_p4  ;;  %s39_s27 = ssub.s32 %s523_s0, %s705_s22 }
  0x14   : > { %s41_s28 = sor.u32 %s40_s24, %s39_s27  ;;  %s107_s29 = sand.u32 1, %s507_s15  }
  0x15   : > { %p42_p9 = scmp.eq.s32.totalorder %s41_s28, 0  ;;  %s332_s30 = sshll.u32 %s107_s29, 2 }
  0x16   : > { %s333_s3 = sshll.u32 %s523_s0, 1  ;;  %s111_s7 = scalar_lea.vmem [#allocation5], %s332_s30 }
  0x17   : > { %s616_s4 = scalar_select %p42_p9, %s507_s15, %s44_s23  }
  0x18   : > { %s115_s5 = sadd.s32 %s519_s18, %s333_s3  ;;  %s121_s8 = sshll.u32 %s111_s7, 4  ;;  %s122_s8 = int_to_ptr.vmem [resolvable:$true] %s121_s8 }
  0x19   : > { %s334_s6 = sshll.u32 %s115_s5, 2  ;;  %p347_p10 = pnand %p350_p8, %p600_p5 }
  0x1a   : > { %s117_s11 = scalar_lea.hbm %s689_s1, %s334_s6  ;;  %p335_p11 = scmp.ge.s32.totalorder %s527_s19, 1 }
  0x1b   : > { %s119_s12 = sshll.u32 %s117_s11, 4  ;;  %p126_p12 = scmp.lt.s32.totalorder %s527_s19, 5  ;;  %s120_s12 = int_to_ptr.hbm [resolvable:$true] %s119_s12 }
  0x1c   : > { %s108_s13 = scalar_lea.sflag [#allocation6], %s107_s29 }
  0x1d   : > { %349 = dma.hbm_to_vmem [thread:$0]  (!%p347_p10), %s120_s12, 64, %s122_s8, %s108_s13  }
  0x1e   : > { %p127_p13 = pnand %p335_p11, %p126_p12 }
  0x1f   : > { %s132_s20 = sand.u32 (!%p127_p13), 1, %s503_s14  }
  0x20   : > { %130 = sbr.rel (%p127_p13) target bundleno = 101 (0x65), region = 24  ;;  %s629_s23 = sshll.u32 (!%p127_p13), %s132_s20, 2 }
  0x21   : > { %s133_s24 = scalar_lea.sflag (!%p127_p13), [#allocation6], %s132_s20  ;;  %s136_s27 = scalar_lea.vmem (!%p127_p13), [#allocation5], %s629_s23 }
  0x25   : > { %494 = dma.done.wait (%p606_p7), %s133_s24, 64  }
  0x26   : > { %496 = vsyncadd (%p606_p7), %s133_s24, 4294967232  ;;  %p155_p0 = scmp.lt.s32.totalorder %s515_s17, 1  ;;  %s638_s25 = sshll.u32 %s511_s16, 3 }
  0x27   : > { %s160_s28 = sadd.s32 7, %s638_s25  ;;  %p339_p1 = scmp.ne.s32.totalorder %s511_s16, 0 }
  0x28   : > { %s156_s29 = scalar_select %p155_p0, %s515_s17, 1 }
  0x29   : > { %164 = sbr.rel (%p339_p1) target bundleno = 50 (0x32), region = 32 }
  0x2a   : > { %s337_s30 = sshll.u32 %s156_s29, 2 }
  0x2b   : > { %s645_s6 = scalar_lea.vmem %s690_s2, %s337_s30 }
  0x2e   : > { %vm165_vm0 = vcmask 261120   ;;  %v168_v0 = vld [vmem:[%s136_s27] sm:$0x1]  ;;  %vm170_vm1 = vcmask 253952   ;;  %v530_v1 = vmov 0.0  }
  0x2f   : > { %166 = vst.msk [vmem:[#allocation2] sm:$0xff] %vm165_vm0, %v530_v1  ;;  %v169_v2 = vunpack.c.l.bf16 %v168_v0 }
  0x30   : > { %167 = vst.msk [vmem:[#allocation2 + $0x8] sm:$0xff] %vm165_vm0, %v530_v1 }
  0x31   : > { %171 = vst.msk [vmem:[%s645_s6] sm:$0x1] %vm170_vm1, %v169_v2 }
  0x32 PF: > { %v172_v3 = vlaneseq  ;;  %s340_s26 = sshll.u32 %s515_s17, 2  ;;  %v174_v4 = vstv %s638_s25 }
  0x33   : > { %s177_s7 = sld [smem:[#allocation4 + %s340_s26]]  ;;  %s178_s8 = sadd.s32 1, %s340_s26 }
  0x34   : > { %v173_v5 = vshrl.u32 %v172_v3, 7  ;;  %s179_s9 = sld [smem:[#allocation4 + %s178_s8]]  ;;  %s180_s10 = sadd.s32 2, %s340_s26 }
  0x35   : > { %s181_s11 = sld [smem:[#allocation4 + %s180_s10]]  ;;  %s182_s12 = sadd.s32 3, %s340_s26 }
  0x36   : > { %v175_v6 = vadd.s32 %v174_v4, %v173_v5  ;;  %s183_s13 = sld [smem:[#allocation4 + %s182_s12]] }
  0x39   : > { %p184_p2 = scmp.le.s32.totalorder %s177_s7, %s160_s28 }
  0x3a   : > { %p185_p3 = scmp.ge.s32.totalorder %s179_s9, %s638_s25 }
  0x3b   : > { %p188_p4 = scmp.le.s32.totalorder %s181_s11, %s160_s28 }
  0x3c   : > { %p186_p5 = pnand %p185_p3, %p184_p2  ;;  %p189_p6 = scmp.ge.s32.totalorder %s183_s13, %s638_s25 }
  0x3e   : > { %p187_p7 = pneg %p186_p5  ;;  %p190_p8 = pnand %p189_p6, %p188_p4 }
  0x40   : > { %p191_p9 = pneg %p190_p8 }
  0x42   : > { %p192_p10 = por %p191_p9, %p187_p7 }
  0x43   : > { %v196_v7 = vld [vmem:[%s136_s27] sm:$0xf] (%p192_p10)  ;;  %v198_v8 = vstv (%p192_p10), %s177_s7  ;;  %v200_v9 = vstv (%p192_p10), %s179_s9  ;;  %v203_v10 = vstv (%p192_p10), %s181_s11  ;;  %v216_v12 = vld [vmem:[#allocation2] sm:$0xff] (%p192_p10)  ;;  %vm218_vm6 = vcmask (%p192_p10), 261120   ;;  %v221_v15 = vld [vmem:[#allocation2 + $0x8] sm:$0xff] (%p192_p10) }
  0x44   : > { %195 = sbr.rel (!%p192_p10) target bundleno = 76 (0x4c), region = 36  ;;  %v197_v11 = vunpack.c.l.bf16 (%p192_p10), %v196_v7  ;;  %vm199_vm2 = vcmp.ge.s32.totalorder (%p192_p10), %v175_v6, %v198_v8  ;;  %vm201_vm3 = vcmp.le.s32.totalorder (%p192_p10), %v175_v6, %v200_v9  ;;  %vm204_vm4 = vcmp.ge.s32.totalorder (%p192_p10), %v175_v6, %v203_v10 }
  0x45   : > { %vm202_vm5 = vmand (%p192_p10), %vm199_vm2, %vm201_vm3  ;;  %v205_v13 = vstv (%p192_p10), %s183_s13 }
  0x46   : > { %v210_v14 = vsel (%p192_p10), %vm202_vm5, %v197_v11, 0.0  ;;  %vm206_vm7 = vcmp.le.s32.totalorder (%p192_p10), %v175_v6, %v205_v13 }
  0x47   : > { %v217_v16 = vadd.f32 (%p192_p10), %v216_v12, %v210_v14  ;;  %vm207_vm8 = vmand (%p192_p10), %vm204_vm4, %vm206_vm7 }
  0x48   : > { %v214_v17 = vsel (%p192_p10), %vm207_vm8, %v197_v11, 0.0 }
  0x49   : > { %219 = vst.msk [vmem:[#allocation2] sm:$0xff] %vm218_vm6, %v217_v16  ;;  %v222_v18 = vadd.f32 %v221_v15, %v214_v17 }
  0x4b   : > { %223 = vst.msk [vmem:[#allocation2 + $0x8] sm:$0xff] %vm218_vm6, %v222_v18 }
  0x4c PF: > { %p341_p11 = scmp.ne.s32.totalorder %s511_s16, 1 }
  0x4e   : > { %227 = sbr.rel (%p341_p11) target bundleno = 101 (0x65), region = 40 }
  0x53   : > { %v228_v19 = vld [vmem:[#allocation2] sm:$0xff]  ;;  %vm230_vm9 = vcmask 261120   ;;  %v229_v20 = vld [vmem:[#allocation2 + $0x8] sm:$0xff]  ;;  %vm246_vm10 = vcmask 253952  }
  0x54   : > { %v231_v21 = vsel %vm230_vm9, %v228_v19, 0.0  ;;  %v238_v22 = vsel %vm230_vm9, %v229_v20, 0.0 }
  0x55   : > { %v232_v23 = vrot.slane %v231_v21, 4  ;;  %v239_v24 = vrot.slane %v238_v22, 4 }
  0x57   : > { %v233_v25 = vadd.f32 %v232_v23, %v231_v21  ;;  %v240_v26 = vadd.f32 %v239_v24, %v238_v22 }
  0x59   : > { %v234_v27 = vrot.slane %v233_v25, 2  ;;  %v241_v28 = vrot.slane %v240_v26, 2 }
  0x5b   : > { %v235_v29 = vadd.f32 %v234_v27, %v233_v25  ;;  %v242_v30 = vadd.f32 %v241_v28, %v240_v26 }
  0x5d   : > { %v236_v31 = vrot.slane %v235_v29, 1  ;;  %v243_v32 = vrot.slane %v242_v30, 1 }
  0x5f   : > { %v237_v33 = vadd.f32 %v236_v31, %v235_v29  ;;  %v244_v34 = vadd.f32 %v243_v32, %v242_v30 }
  0x61   : > { %v245_v35 = vmul.f32 0.0625, %v237_v33  ;;  %v248_v36 = vmul.f32 0.0625, %v244_v34 }
  0x63   : > { %247 = vst.msk [vmem:[%s645_s6 + $0x1] sm:$0x1] %vm246_vm10, %v245_v35 }
  0x64   : > { %249 = vst.msk [vmem:[%s645_s6 + $0x2] sm:$0x1] %vm246_vm10, %v248_v36 }
  0x65 PF: > { %s23_s19 = sadd.s32 1, %s527_s19   ;;  %s693_s13 = smov %s503_s14 }
  0x66   : > { %p20_p12 = scmp.ge.s32.totalorder %s23_s19, 6   ;;  %s694_s14 = smov %s507_s15 }
  0x67   : > { %s695_s15 = smov %s616_s4  ;;  %s696_s16 = smov %s519_s18 }
  0x68   : > { %s697_s17 = smov %s523_s0  ;;  %s698_s18 = smov %s701_s21 }
  0x69   : > { %s699_s0 = smov %s705_s22  ;;  %22 = sbr.rel (!%p20_p12) target bundleno = 11 (0xb), region = 77 }
  0x6e   :  { %269 = vsyncpa [#allocation6], 1 }
  0x6f   :  { %271 = vsyncpa [#allocation6 + $0x1], 1 }

</bundles_post_ra>
